<compile_context>
chip_gen: v7x
topology: tpu7x:2x2x1
jax: 0.10.0
libtpu: 0.0.40
codegen_flags: <defaults>
</compile_context>

<pallas_src>
import math

import jax
import jax.numpy as jnp
from jax import lax
from jax.experimental import pallas as pl
from jax.experimental.pallas import tpu as pltpu

# ---- model hyper-parameters (small, consistent with the module) -------------
B = 2             # batch
T = 8             # sequence length
E = 32            # n_embd
N_HEAD = 4        # n_head
HD = E // N_HEAD  # head dim (n_embd // n_head)
BT = B * T        # flattened token count


def mha_kernel(x_ref, wqkv_ref, bqkv_ref, wo_ref, bo_ref, mask_ref, o_ref, cat_ref):
    """Fused multi-head attention over all B*T tokens in one invocation.

    x_ref:    (BT, E)              flattened tokens
    wqkv_ref: (E, N_HEAD*3*HD)     fused per-head qkv weights, Q columns pre-scaled
    bqkv_ref: (1, N_HEAD*3*HD)     fused qkv biases (row vector), Q entries pre-scaled
    wo_ref:   (E, E)               output projection weight (in, out)
    bo_ref:   (1, E)               output projection bias (row vector)
    mask_ref: (BT, BT)             precomputed block-diagonal additive mask (0 / -1e30)
    o_ref:    (BT, E)              output
    cat_ref:  (BT, E) f32 scratch  concatenated head outputs (lane-offset writes)
    """
    x = x_ref[...]                                                    # (BT, E)

    # One fused QKV projection for all heads: (BT, E) @ (E, 3E) -> (BT, 3E).
    # The 1/sqrt(HD) scale is already folded into the Q columns/bias.
    qkv = jnp.dot(x, wqkv_ref[...], preferred_element_type=jnp.float32)
    qkv = qkv + bqkv_ref[...]                                         # (1, 3E) broadcast

    neg_bias = mask_ref[...]                                          # (BT, BT), precomputed

    for h in range(N_HEAD):                                           # static unroll
        base = 3 * HD * h
        q = qkv[:, base:base + HD]                                    # (BT, HD) pre-scaled
        k = qkv[:, base + HD:base + 2 * HD]                           # (BT, HD)
        v = qkv[:, base + 2 * HD:base + 3 * HD]                       # (BT, HD)

        # Contract on the head dim directly: no explicit k.T (no XLU transpose).
        scores = lax.dot_general(
            q, k, dimension_numbers=(((1,), (1,)), ((), ())),
            preferred_element_type=jnp.float32)                       # (BT, BT)
        scores = scores + neg_bias

        # Numerically stable softmax; normalize AFTER the PV matmul so the
        # reciprocal multiply touches (BT,HD) instead of (BT,BT).
        m = jnp.max(scores, axis=-1, keepdims=True)
        p = jnp.exp(scores - m)                                       # unnormalized probs
        denom = jnp.sum(p, axis=-1, keepdims=True)

        head_out = jnp.dot(p, v, preferred_element_type=jnp.float32)  # (BT, HD)
        head_out = head_out * pl.reciprocal(denom, approx=True)       # EUP slot

        # Static lane-offset write into the concat scratch (no jnp.concatenate).
        cat_ref[:, h * HD:(h + 1) * HD] = head_out

    # Single output projection: (BT,E) @ (E,E) — one MXU pop instead of 4 + adds.
    out = jnp.dot(cat_ref[...], wo_ref[...], preferred_element_type=jnp.float32)
    out = out + bo_ref[...]                                           # (1, E) broadcast
    o_ref[...] = out.astype(o_ref.dtype)


def multi_head_attention(x, wqkv, bqkv, wo, bo):
    """x: (B, T, E) -> (B, T, E). Single pipeline step; whole problem in VMEM."""
    b, t, e = x.shape
    bt = b * t
    x2 = x.reshape(bt, e)                                             # free XLA reshape

    # Fold the softmax scale into the Q columns of the fused qkv weight/bias.
    scale = 1.0 / math.sqrt(float(HD))
    col_scale = jnp.concatenate([
        jnp.full((HD,), scale, dtype=wqkv.dtype),
        jnp.ones((2 * HD,), dtype=wqkv.dtype),
    ])                                                                # (3*HD,)
    wqkv2 = (wqkv * col_scale).transpose(1, 0, 2).reshape(e, N_HEAD * 3 * HD)
    bqkv2 = (bqkv * col_scale).reshape(1, N_HEAD * 3 * HD)
    bo2 = bo.reshape(1, e)

    # Precomputed block-diagonal additive mask (tokens attend only within their batch).
    rows = jnp.arange(bt, dtype=jnp.int32) // t
    neg_bias = jnp.where(rows[:, None] == rows[None, :], 0.0, -1e30).astype(jnp.float32)

    out = pl.pallas_call(
        mha_kernel,
        out_shape=jax.ShapeDtypeStruct((bt, e), x.dtype),
        grid_spec=pltpu.PrefetchScalarGridSpec(
            num_scalar_prefetch=0,
            grid=(1,),
            in_specs=[
                pl.BlockSpec((bt, e), lambda i: (0, 0)),
                pl.BlockSpec((e, N_HEAD * 3 * HD), lambda i: (0, 0)),
                pl.BlockSpec((1, N_HEAD * 3 * HD), lambda i: (0, 0)),
                pl.BlockSpec((e, e), lambda i: (0, 0)),
                pl.BlockSpec((1, e), lambda i: (0, 0)),
                pl.BlockSpec((bt, bt), lambda i: (0, 0)),
            ],
            out_specs=pl.BlockSpec((bt, e), lambda i: (0, 0)),
            scratch_shapes=[pltpu.VMEM((bt, e), jnp.float32)],
        ),
        compiler_params=pltpu.CompilerParams(
            dimension_semantics=("arbitrary",)),
    )(x2, wqkv2, bqkv2, wo, bo2, neg_bias)
    return out.reshape(b, t, e)


def reference(x, wqkv, bqkv, wo, bo):
    """Pure-JAX reference mirroring the torch module's intended semantics."""
    heads = []
    for h in range(N_HEAD):
        qkv = x @ wqkv[h] + bqkv[h]                                   # (B, T, 3*HD)
        q, k, v = jnp.split(qkv, 3, axis=-1)
        scores = jnp.einsum("btd,bsd->bts", q, k) / math.sqrt(float(HD))
        p = jax.nn.softmax(scores, axis=-1)
        heads.append(jnp.einsum("bts,bsd->btd", p, v))
    cat = jnp.concatenate(heads, axis=-1)                             # (B, T, E)
    return cat @ wo + bo


if __name__ == "__main__":
    key = jax.random.PRNGKey(0)
    kx, kw1, kb1, kw2, kb2 = jax.random.split(key, 5)

    # deterministic synthetic parameters (shapes from the module's __init__)
    x = jax.random.normal(kx, (B, T, E), dtype=jnp.float32)
    wqkv = jax.random.normal(kw1, (N_HEAD, E, 3 * HD), dtype=jnp.float32) * 0.1
    bqkv = jax.random.normal(kb1, (N_HEAD, 3 * HD), dtype=jnp.float32) * 0.1
    wo = jax.random.normal(kw2, (E, E), dtype=jnp.float32) * 0.1
    bo = jax.random.normal(kb2, (E,), dtype=jnp.float32) * 0.1

    out = multi_head_attention(x, wqkv, bqkv, wo, bo)
    out = jax.block_until_ready(out)

    ref = reference(x, wqkv, bqkv, wo, bo)
    assert out.shape == (B, T, E)
    # tolerance accounts for the approx (EUP) reciprocal in the softmax normalization
    assert jnp.allclose(out, ref, atol=2e-3, rtol=2e-3), "mismatch vs reference"

    print("KERNEL_OK")
</pallas_src>

<mosaic_0001>
module attributes {stable_mosaic.version = 11 : i64} {
  func.func @mha_kernel(%arg0: i32, %arg1: memref<16x32xf32, #tpu.memory_space<vmem>>, %arg2: memref<32x96xf32, #tpu.memory_space<vmem>>, %arg3: memref<1x96xf32, #tpu.memory_space<vmem>>, %arg4: memref<32x32xf32, #tpu.memory_space<vmem>>, %arg5: memref<1x32xf32, #tpu.memory_space<vmem>>, %arg6: memref<16x16xf32, #tpu.memory_space<vmem>>, %arg7: memref<16x32xf32, #tpu.memory_space<vmem>>, %arg8: memref<16x32xf32, #tpu.memory_space<vmem>>) attributes {dimension_semantics = [#tpu.dimension_semantics<arbitrary>], iteration_bounds = array<i64: 1>, scalar_prefetch = 0 : i64, scratch_operands = 1 : i64, tpu.core_type = #tpu.core_type<tc>, window_params = [{pipeline_mode = #tpu.pipeline_mode<synchronous>, transform_indices = @transform_0, window_bounds = array<i64: 16, 32>}, {pipeline_mode = #tpu.pipeline_mode<synchronous>, transform_indices = @transform_1, window_bounds = array<i64: 32, 96>}, {pipeline_mode = #tpu.pipeline_mode<synchronous>, transform_indices = @transform_2, window_bounds = array<i64: 1, 96>}, {pipeline_mode = #tpu.pipeline_mode<synchronous>, transform_indices = @transform_3, window_bounds = array<i64: 32, 32>}, {pipeline_mode = #tpu.pipeline_mode<synchronous>, transform_indices = @transform_4, window_bounds = array<i64: 1, 32>}, {pipeline_mode = #tpu.pipeline_mode<synchronous>, transform_indices = @transform_5, window_bounds = array<i64: 16, 16>}, {pipeline_mode = #tpu.pipeline_mode<synchronous>, transform_indices = @transform_6, window_bounds = array<i64: 16, 32>}]} {
    %c0 = arith.constant 0 : index
    %c0_0 = arith.constant 0 : index
    %0 = vector.load %arg1[%c0, %c0_0] : memref<16x32xf32, #tpu.memory_space<vmem>>, vector<16x32xf32>
    %c0_1 = arith.constant 0 : index
    %c0_2 = arith.constant 0 : index
    %1 = vector.load %arg2[%c0_1, %c0_2] : memref<32x96xf32, #tpu.memory_space<vmem>>, vector<32x96xf32>
    %cst = arith.constant dense<0.000000e+00> : vector<16x96xf32>
    %2 = tpu.matmul %0, %1, %cst {dimension_numbers = #tpu.dot_dimension_numbers<[1], [0], [0], [1], [0, 0, 1, 1], [], []>} : vector<16x32xf32>, vector<32x96xf32>, vector<16x96xf32> -> vector<16x96xf32>
    %c0_3 = arith.constant 0 : index
    %c0_4 = arith.constant 0 : index
    %3 = vector.load %arg3[%c0_3, %c0_4] : memref<1x96xf32, #tpu.memory_space<vmem>>, vector<1x96xf32>
    %4 = vector.broadcast %3 : vector<1x96xf32> to vector<16x96xf32>
    %5 = arith.addf %2, %4 : vector<16x96xf32>
    %c0_5 = arith.constant 0 : index
    %c0_6 = arith.constant 0 : index
    %6 = vector.load %arg6[%c0_5, %c0_6] : memref<16x16xf32, #tpu.memory_space<vmem>>, vector<16x16xf32>
    %7 = vector.extract_strided_slice %5 {offsets = [0, 0], sizes = [16, 8], strides = [1, 1]} : vector<16x96xf32> to vector<16x8xf32>
    %8 = vector.extract_strided_slice %5 {offsets = [0, 8], sizes = [16, 8], strides = [1, 1]} : vector<16x96xf32> to vector<16x8xf32>
    %9 = vector.extract_strided_slice %5 {offsets = [0, 16], sizes = [16, 8], strides = [1, 1]} : vector<16x96xf32> to vector<16x8xf32>
    %cst_7 = arith.constant dense<0.000000e+00> : vector<16x16xf32>
    %10 = tpu.matmul %7, %8, %cst_7 {dimension_numbers = #tpu.dot_dimension_numbers<[1], [1], [0], [0], [0, 0, 1, 0], [], []>} : vector<16x8xf32>, vector<16x8xf32>, vector<16x16xf32> -> vector<16x16xf32>
    %11 = arith.addf %10, %6 : vector<16x16xf32>
    %cst_8 = arith.constant dense<0xFF800000> : vector<16xf32>
    %12 = vector.multi_reduction <maximumf>, %11, %cst_8 [1] : vector<16x16xf32> to vector<16xf32>
    %13 = vector.shape_cast %12 : vector<16xf32> to vector<16x1xf32>
    %14 = vector.broadcast %13 : vector<16x1xf32> to vector<16x16xf32>
    %15 = arith.subf %11, %14 : vector<16x16xf32>
    %16 = math.exp %15 : vector<16x16xf32>
    %cst_9 = arith.constant dense<0.000000e+00> : vector<16xf32>
    %17 = vector.multi_reduction <add>, %16, %cst_9 [1] : vector<16x16xf32> to vector<16xf32>
    %18 = vector.shape_cast %17 : vector<16xf32> to vector<16x1xf32>
    %cst_10 = arith.constant dense<0.000000e+00> : vector<16x8xf32>
    %19 = tpu.matmul %16, %9, %cst_10 {dimension_numbers = #tpu.dot_dimension_numbers<[1], [0], [0], [1], [0, 0, 1, 1], [], []>} : vector<16x16xf32>, vector<16x8xf32>, vector<16x8xf32> -> vector<16x8xf32>
    %20 = tpu.reciprocal %18 {approx = true} : vector<16x1xf32> -> vector<16x1xf32>
    %21 = vector.broadcast %20 : vector<16x1xf32> to vector<16x8xf32>
    %22 = arith.mulf %19, %21 : vector<16x8xf32>
    %c0_11 = arith.constant 0 : index
    %c0_12 = arith.constant 0 : index
    %23 = vector.load %arg8[%c0_11, %c0_12] : memref<16x32xf32, #tpu.memory_space<vmem>>, vector<16x8xf32>
    tpu.vector_store %arg8[%c0_11, %c0_12], %22 {strides = array<i32>} : memref<16x32xf32, #tpu.memory_space<vmem>>, vector<16x8xf32>,
    %24 = vector.extract_strided_slice %5 {offsets = [0, 24], sizes = [16, 8], strides = [1, 1]} : vector<16x96xf32> to vector<16x8xf32>
    %25 = vector.extract_strided_slice %5 {offsets = [0, 32], sizes = [16, 8], strides = [1, 1]} : vector<16x96xf32> to vector<16x8xf32>
    %26 = vector.extract_strided_slice %5 {offsets = [0, 40], sizes = [16, 8], strides = [1, 1]} : vector<16x96xf32> to vector<16x8xf32>
    %cst_13 = arith.constant dense<0.000000e+00> : vector<16x16xf32>
    %27 = tpu.matmul %24, %25, %cst_13 {dimension_numbers = #tpu.dot_dimension_numbers<[1], [1], [0], [0], [0, 0, 1, 0], [], []>} : vector<16x8xf32>, vector<16x8xf32>, vector<16x16xf32> -> vector<16x16xf32>
    %28 = arith.addf %27, %6 : vector<16x16xf32>
    %cst_14 = arith.constant dense<0xFF800000> : vector<16xf32>
    %29 = vector.multi_reduction <maximumf>, %28, %cst_14 [1] : vector<16x16xf32> to vector<16xf32>
    %30 = vector.shape_cast %29 : vector<16xf32> to vector<16x1xf32>
    %31 = vector.broadcast %30 : vector<16x1xf32> to vector<16x16xf32>
    %32 = arith.subf %28, %31 : vector<16x16xf32>
    %33 = math.exp %32 : vector<16x16xf32>
    %cst_15 = arith.constant dense<0.000000e+00> : vector<16xf32>
    %34 = vector.multi_reduction <add>, %33, %cst_15 [1] : vector<16x16xf32> to vector<16xf32>
    %35 = vector.shape_cast %34 : vector<16xf32> to vector<16x1xf32>
    %cst_16 = arith.constant dense<0.000000e+00> : vector<16x8xf32>
    %36 = tpu.matmul %33, %26, %cst_16 {dimension_numbers = #tpu.dot_dimension_numbers<[1], [0], [0], [1], [0, 0, 1, 1], [], []>} : vector<16x16xf32>, vector<16x8xf32>, vector<16x8xf32> -> vector<16x8xf32>
    %37 = tpu.reciprocal %35 {approx = true} : vector<16x1xf32> -> vector<16x1xf32>
    %38 = vector.broadcast %37 : vector<16x1xf32> to vector<16x8xf32>
    %39 = arith.mulf %36, %38 : vector<16x8xf32>
    %c0_17 = arith.constant 0 : index
    %c8 = arith.constant 8 : index
    %40 = vector.load %arg8[%c0_17, %c8] : memref<16x32xf32, #tpu.memory_space<vmem>>, vector<16x8xf32>
    tpu.vector_store %arg8[%c0_17, %c8], %39 {strides = array<i32>} : memref<16x32xf32, #tpu.memory_space<vmem>>, vector<16x8xf32>,
    %41 = vector.extract_strided_slice %5 {offsets = [0, 48], sizes = [16, 8], strides = [1, 1]} : vector<16x96xf32> to vector<16x8xf32>
    %42 = vector.extract_strided_slice %5 {offsets = [0, 56], sizes = [16, 8], strides = [1, 1]} : vector<16x96xf32> to vector<16x8xf32>
    %43 = vector.extract_strided_slice %5 {offsets = [0, 64], sizes = [16, 8], strides = [1, 1]} : vector<16x96xf32> to vector<16x8xf32>
    %cst_18 = arith.constant dense<0.000000e+00> : vector<16x16xf32>
    %44 = tpu.matmul %41, %42, %cst_18 {dimension_numbers = #tpu.dot_dimension_numbers<[1], [1], [0], [0], [0, 0, 1, 0], [], []>} : vector<16x8xf32>, vector<16x8xf32>, vector<16x16xf32> -> vector<16x16xf32>
    %45 = arith.addf %44, %6 : vector<16x16xf32>
    %cst_19 = arith.constant dense<0xFF800000> : vector<16xf32>
    %46 = vector.multi_reduction <maximumf>, %45, %cst_19 [1] : vector<16x16xf32> to vector<16xf32>
    %47 = vector.shape_cast %46 : vector<16xf32> to vector<16x1xf32>
    %48 = vector.broadcast %47 : vector<16x1xf32> to vector<16x16xf32>
    %49 = arith.subf %45, %48 : vector<16x16xf32>
    %50 = math.exp %49 : vector<16x16xf32>
    %cst_20 = arith.constant dense<0.000000e+00> : vector<16xf32>
    %51 = vector.multi_reduction <add>, %50, %cst_20 [1] : vector<16x16xf32> to vector<16xf32>
    %52 = vector.shape_cast %51 : vector<16xf32> to vector<16x1xf32>
    %cst_21 = arith.constant dense<0.000000e+00> : vector<16x8xf32>
    %53 = tpu.matmul %50, %43, %cst_21 {dimension_numbers = #tpu.dot_dimension_numbers<[1], [0], [0], [1], [0, 0, 1, 1], [], []>} : vector<16x16xf32>, vector<16x8xf32>, vector<16x8xf32> -> vector<16x8xf32>
    %54 = tpu.reciprocal %52 {approx = true} : vector<16x1xf32> -> vector<16x1xf32>
    %55 = vector.broadcast %54 : vector<16x1xf32> to vector<16x8xf32>
    %56 = arith.mulf %53, %55 : vector<16x8xf32>
    %c0_22 = arith.constant 0 : index
    %c16 = arith.constant 16 : index
    %57 = vector.load %arg8[%c0_22, %c16] : memref<16x32xf32, #tpu.memory_space<vmem>>, vector<16x8xf32>
    tpu.vector_store %arg8[%c0_22, %c16], %56 {strides = array<i32>} : memref<16x32xf32, #tpu.memory_space<vmem>>, vector<16x8xf32>,
    %58 = vector.extract_strided_slice %5 {offsets = [0, 72], sizes = [16, 8], strides = [1, 1]} : vector<16x96xf32> to vector<16x8xf32>
    %59 = vector.extract_strided_slice %5 {offsets = [0, 80], sizes = [16, 8], strides = [1, 1]} : vector<16x96xf32> to vector<16x8xf32>
    %60 = vector.extract_strided_slice %5 {offsets = [0, 88], sizes = [16, 8], strides = [1, 1]} : vector<16x96xf32> to vector<16x8xf32>
    %cst_23 = arith.constant dense<0.000000e+00> : vector<16x16xf32>
    %61 = tpu.matmul %58, %59, %cst_23 {dimension_numbers = #tpu.dot_dimension_numbers<[1], [1], [0], [0], [0, 0, 1, 0], [], []>} : vector<16x8xf32>, vector<16x8xf32>, vector<16x16xf32> -> vector<16x16xf32>
    %62 = arith.addf %61, %6 : vector<16x16xf32>
    %cst_24 = arith.constant dense<0xFF800000> : vector<16xf32>
    %63 = vector.multi_reduction <maximumf>, %62, %cst_24 [1] : vector<16x16xf32> to vector<16xf32>
    %64 = vector.shape_cast %63 : vector<16xf32> to vector<16x1xf32>
    %65 = vector.broadcast %64 : vector<16x1xf32> to vector<16x16xf32>
    %66 = arith.subf %62, %65 : vector<16x16xf32>
    %67 = math.exp %66 : vector<16x16xf32>
    %cst_25 = arith.constant dense<0.000000e+00> : vector<16xf32>
    %68 = vector.multi_reduction <add>, %67, %cst_25 [1] : vector<16x16xf32> to vector<16xf32>
    %69 = vector.shape_cast %68 : vector<16xf32> to vector<16x1xf32>
    %cst_26 = arith.constant dense<0.000000e+00> : vector<16x8xf32>
    %70 = tpu.matmul %67, %60, %cst_26 {dimension_numbers = #tpu.dot_dimension_numbers<[1], [0], [0], [1], [0, 0, 1, 1], [], []>} : vector<16x16xf32>, vector<16x8xf32>, vector<16x8xf32> -> vector<16x8xf32>
    %71 = tpu.reciprocal %69 {approx = true} : vector<16x1xf32> -> vector<16x1xf32>
    %72 = vector.broadcast %71 : vector<16x1xf32> to vector<16x8xf32>
    %73 = arith.mulf %70, %72 : vector<16x8xf32>
    %c0_27 = arith.constant 0 : index
    %c24 = arith.constant 24 : index
    %74 = vector.load %arg8[%c0_27, %c24] : memref<16x32xf32, #tpu.memory_space<vmem>>, vector<16x8xf32>
    tpu.vector_store %arg8[%c0_27, %c24], %73 {strides = array<i32>} : memref<16x32xf32, #tpu.memory_space<vmem>>, vector<16x8xf32>,
    %c0_28 = arith.constant 0 : index
    %c0_29 = arith.constant 0 : index
    %75 = vector.load %arg8[%c0_28, %c0_29] : memref<16x32xf32, #tpu.memory_space<vmem>>, vector<16x32xf32>
    %c0_30 = arith.constant 0 : index
    %c0_31 = arith.constant 0 : index
    %76 = vector.load %arg4[%c0_30, %c0_31] : memref<32x32xf32, #tpu.memory_space<vmem>>, vector<32x32xf32>
    %cst_32 = arith.constant dense<0.000000e+00> : vector<16x32xf32>
    %77 = tpu.matmul %75, %76, %cst_32 {dimension_numbers = #tpu.dot_dimension_numbers<[1], [0], [0], [1], [0, 0, 1, 1], [], []>} : vector<16x32xf32>, vector<32x32xf32>, vector<16x32xf32> -> vector<16x32xf32>
    %c0_33 = arith.constant 0 : index
    %c0_34 = arith.constant 0 : index
    %78 = vector.load %arg5[%c0_33, %c0_34] : memref<1x32xf32, #tpu.memory_space<vmem>>, vector<1x32xf32>
    %79 = vector.broadcast %78 : vector<1x32xf32> to vector<16x32xf32>
    %80 = arith.addf %77, %79 : vector<16x32xf32>
    %c0_35 = arith.constant 0 : index
    %c0_36 = arith.constant 0 : index
    %81 = vector.load %arg7[%c0_35, %c0_36] : memref<16x32xf32, #tpu.memory_space<vmem>>, vector<16x32xf32>
    tpu.vector_store %arg7[%c0_35, %c0_36], %80 {strides = array<i32>} : memref<16x32xf32, #tpu.memory_space<vmem>>, vector<16x32xf32>,
    return
  }
  func.func @transform_0(%arg0: i32) -> (i32, i32) {
    %c0_i32 = arith.constant 0 : i32
    %c0_i32_0 = arith.constant 0 : i32
    %c0_i32_1 = arith.constant 0 : i32
    return %c0_i32, %c0_i32_0 : i32, i32
  }
  func.func @transform_1(%arg0: i32) -> (i32, i32) {
    %c0_i32 = arith.constant 0 : i32
    %c0_i32_0 = arith.constant 0 : i32
    %c0_i32_1 = arith.constant 0 : i32
    return %c0_i32, %c0_i32_0 : i32, i32
  }
  func.func @transform_2(%arg0: i32) -> (i32, i32) {
    %c0_i32 = arith.constant 0 : i32
    %c0_i32_0 = arith.constant 0 : i32
    %c0_i32_1 = arith.constant 0 : i32
    return %c0_i32, %c0_i32_0 : i32, i32
  }
  func.func @transform_3(%arg0: i32) -> (i32, i32) {
    %c0_i32 = arith.constant 0 : i32
    %c0_i32_0 = arith.constant 0 : i32
    %c0_i32_1 = arith.constant 0 : i32
    return %c0_i32, %c0_i32_0 : i32, i32
  }
  func.func @transform_4(%arg0: i32) -> (i32, i32) {
    %c0_i32 = arith.constant 0 : i32
    %c0_i32_0 = arith.constant 0 : i32
    %c0_i32_1 = arith.constant 0 : i32
    return %c0_i32, %c0_i32_0 : i32, i32
  }
  func.func @transform_5(%arg0: i32) -> (i32, i32) {
    %c0_i32 = arith.constant 0 : i32
    %c0_i32_0 = arith.constant 0 : i32
    %c0_i32_1 = arith.constant 0 : i32
    return %c0_i32, %c0_i32_0 : i32, i32
  }
  func.func @transform_6(%arg0: i32) -> (i32, i32) {
    %c0_i32 = arith.constant 0 : i32
    %c0_i32_0 = arith.constant 0 : i32
    %c0_i32_1 = arith.constant 0 : i32
    return %c0_i32, %c0_i32_0 : i32, i32
  }
}

</mosaic_0001>

<bundles_post_ra>
// kernel: tpu_custom_call.1
= control target key start
LH: loop header
LB: loop body
LE: loop exit
PB: predicated region body
PF: predicated region fallthrough
CT: control target
= control target key end

     0   :  { %11 = vsyncpa [#allocation4], 0  ;;  %s1763_s0 = inlined_call_operand.hbm [shape: f32[16,32], index: 0, kind: input, shape index: {}]   ;;  %s1764_s1 = inlined_call_operand.hbm [shape: f32[32,96], index: 1, kind: input, shape index: {}]   ;;  %s1765_s2 = inlined_call_operand.vmem [shape: f32[1,96], index: 2, kind: input, shape index: {}]   ;;  %s1766_s3 = inlined_call_operand.hbm [shape: f32[32,32], index: 3, kind: input, shape index: {}]   ;;  %s1767_s4 = inlined_call_operand.vmem [shape: f32[1,32], index: 4, kind: input, shape index: {}]   ;;  %s1768_s5 = inlined_call_operand.vmem [shape: f32[16,16], index: 5, kind: input, shape index: {}]   ;;  %s1769_s6 = inlined_call_operand.hbm [shape: f32[16,32], index: 6, kind: output, shape index: {}]  }
   0x1   :  { %12 = vsyncpa [#allocation7], 0 }
   0x2   :  { %13 = vsyncpa [#allocation5], 0  ;;  %s1504_s21 = smov [#allocation6]   ;;  %s1505_s23 = smov [#allocation3]  }
   0x3   :  { %s31_s22 = sshll.u32 %s1504_s21, 4  ;;  %s19_s24 = sshll.u32 %s1505_s23, 4  ;;  %s32_s22 = int_to_ptr.vmem [resolvable:$true] %s31_s22  ;;  %s1558_s24 = int_to_ptr.vmem [resolvable:$true] %s19_s24 }
   0x4   :  { %s1410_s27 = scalar_lea.hbm %s1764_s1, 512 }
   0x5   :  { %p1411_p0 = scmp.ne.s32.totalorder %s1764_s1, %s1410_s27  ;;  %p1414_p1 = scmp.lt.u32.totalorder %s1410_s27, %s1764_s1 }
   0x7   :  { %p1416_p2 = pnand %p1414_p1, %p1411_p0 }
   0x9   :  { %1419 = shalt.err (!%p1416_p2)
}
   0xa   :  { %s1420_s8 = scalar_lea.vmem %s32_s22, 512  ;;  %p1425_p4 = scmp.lt.s32.totalorder %s32_s22, %s32_s22 }
   0xb   :  { %p1421_p3 = scmp.ne.s32.totalorder %s32_s22, %s1420_s8  ;;  %p1426_p5 = scmp.lt.s32.totalorder %s1420_s8, %s1420_s8 }
   0xd   :  { %p1427_p6 = por %p1426_p5, %p1425_p4 }
   0xf   :  { %p1428_p7 = pnand %p1427_p6, %p1421_p3 }
  0x11   :  { %1431 = shalt.err (!%p1428_p7)
}
  0x12   :  { %s1506_s9 = smov 128   ;;  %s1507_s10 = smov 8  }
  0x13   :  { %37 = dma.hbm_to_vmem [thread:$0]  %s1764_s1, 512, %s32_s22, [#allocation7], %s1506_s9, %s1506_s9, %s1507_s10  }
  0x14   :  { %s1432_s15 = scalar_lea.hbm %s1763_s0, 256 }
  0x15   :  { %p1433_p8 = scmp.ne.s32.totalorder %s1763_s0, %s1432_s15  ;;  %p1436_p9 = scmp.lt.u32.totalorder %s1432_s15, %s1763_s0 }
  0x17   :  { %p1438_p10 = pnand %p1436_p9, %p1433_p8 }
  0x19   :  { %1441 = shalt.err (!%p1438_p10)
}
  0x1a   :  { %s1442_s20 = scalar_lea.vmem %s1558_s24, 256  ;;  %p1447_p12 = scmp.lt.s32.totalorder %s1558_s24, %s1558_s24 }
  0x1b   :  { %p1443_p11 = scmp.ne.s32.totalorder %s1558_s24, %s1442_s20  ;;  %p1448_p13 = scmp.lt.s32.totalorder %s1442_s20, %s1442_s20 }
  0x1d   :  { %p1449_p0 = por %p1448_p13, %p1447_p12 }
  0x1f   :  { %p1450_p1 = pnand %p1449_p0, %p1443_p11 }
  0x21   :  { %1453 = shalt.err (!%p1450_p1)
}
  0x22   :  { %25 = dma.hbm_to_vmem [thread:$0]  %s1763_s0, 256, %s1558_s24, [#allocation4], %s1506_s9, %s1506_s9, %s1507_s10  }
  0x23   :  { %s1508_s22 = smov [#allocation8]   ;;  %s1454_s27 = scalar_lea.hbm %s1766_s3, 512 }
  0x24   :  { %s45_s23 = sshll.u32 %s1508_s22, 4  ;;  %p1455_p2 = scmp.ne.s32.totalorder %s1766_s3, %s1454_s27  ;;  %s46_s23 = int_to_ptr.vmem [resolvable:$true] %s45_s23 }
  0x25   :  { %p1458_p3 = scmp.lt.u32.totalorder %s1454_s27, %s1766_s3 }
  0x27   :  { %p1460_p4 = pnand %p1458_p3, %p1455_p2 }
  0x29   :  { %1463 = shalt.err (!%p1460_p4)
}
  0x2a   :  { %s1464_s8 = scalar_lea.vmem %s46_s23, 512  ;;  %p1469_p6 = scmp.lt.s32.totalorder %s46_s23, %s46_s23 }
  0x2b   :  { %p1465_p5 = scmp.ne.s32.totalorder %s46_s23, %s1464_s8  ;;  %p1470_p7 = scmp.lt.s32.totalorder %s1464_s8, %s1464_s8 }
  0x2d   :  { %p1471_p8 = por %p1470_p7, %p1469_p6 }
  0x2f   :  { %p1472_p9 = pnand %p1471_p8, %p1465_p5 }
  0x31   :  { %1475 = shalt.err (!%p1472_p9)
}
  0x32   :  { %51 = dma.hbm_to_vmem [thread:$0]  %s1766_s3, 512, %s46_s23, [#allocation7], %s1506_s9, %s1506_s9, %s1507_s10  }
  0x33   :  { %1498 = dma.done.wait [#allocation4], 256  }
  0x34   :  { %1499 = vsyncadd [#allocation4], 4294967040 }
  0x35   :  { %1500 = dma.done.wait [#allocation7], 1024  }
  0x36   :  { %1501 = vsyncadd [#allocation7], 4294966272  ;;  %vm78_vm0 = vcmask 261120   ;;  %v67_v0 = vld [vmem:[#allocation6] sm:$0xff]  ;;  %v68_v1 = vld [vmem:[#allocation6 + $0x8] sm:$0xff]  ;;  %vm168_vm1 = vcmask 64512  }
  0x37   :  { %v69_v2 = vld [vmem:[#allocation6 + $0x10] sm:$0xff]  ;;  %v1263_v3 = vpack.c.bf16 %v68_v1, %v67_v0  ;;  %v70_v4 = vld [vmem:[#allocation6 + $0x18] sm:$0xff]  ;;  %v1111_v8 = vld [vmem:[%s1765_s2] ss:$0 sm:$0xff]  ;;  %s1509_s12 = smov 120   ;;  %vm252_vm3 = vcmask 130048  }
  0x38   :  { %v65_v5 = vld [vmem:[#allocation3] sm:$0xff]  ;;  %v1267_v6 = vpack.c.bf16 %v70_v4, %v69_v2  ;;  %v66_v7 = vld [vmem:[#allocation3 + $0x8] sm:$0xff]  ;;  %vm1628_vm2 = vmpackc.low %vm168_vm1, %vm168_vm1  ;;  %s1510_s16 = smov 112   ;;  %s1511_s17 = smov 96   ;;  %vm572_vm4 = vcmask 130112   ;;  %vm783_vm5 = vcmask 195712  }
  0x39   :  { %1193 = vmatprep.mubr.msk.f32.mxu0 %vm78_vm0, %v65_v5  ;;  %1264 = vmatprep.subr.bf16.mxu0 %v1263_v3  ;;  %v1641_v19 = vld [vmem:[%s1768_s5 + $0x8] sm:$0xff]  ;;  %v1646_v20 = vld [vmem:[%s1768_s5] sm:$0xff]  ;;  %s1512_s5 = smov 104   ;;  %s1513_s18 = smov 64   ;;  %vm994_vm6 = vcmask 261312  }
  0x3a   :  { %1266 = vmatpush3.bf16.msra.mxu0 %v1263_v3  ;;  %s1514_s19 = smov 88   ;;  %s1515_s20 = smov 48  }
  0x3b   :  { %1268 = vmatprep.subr.bf16.mxu0 %v1267_v6  ;;  %s1516_s1 = smov 72   ;;  %s1517_s21 = smov 80  }
  0x3c   :  { %s1518_s22 = smov 56   ;;  %s1519_s23 = smov 40  }
  0x3d   :  { %s1520_s25 = smov 16   ;;  %s1521_s26 = smov 24  }
  0x3e   :  { %1270 = vmatpush3.bf16.msra.mxu0 %v1267_v6  ;;  %s1522_s29 = smov [#allocation9]  }
  0x3f   :  { %s1098_s30 = sshll.u32 %s1522_s29, 4  ;;  %s1099_s30 = int_to_ptr.vmem [resolvable:$true] %s1098_s30 }
  0x40   :  { %s1476_s7 = scalar_lea.vmem %s1099_s30, 256  ;;  %p1481_p11 = scmp.lt.s32.totalorder %s1099_s30, %s1099_s30 }
  0x41   :  { %1194 = vmatmul.mubr.msk.f32.vlgmr.msra.gmra.mrb[0].mxu0 %vm78_vm0, %v66_v7  ;;  %p1477_p10 = scmp.ne.s32.totalorder %s1099_s30, %s1476_s7  ;;  %p1482_p12 = scmp.lt.s32.totalorder %s1476_s7, %s1476_s7 }
  0x43   :  { %p1483_p13 = por %p1482_p12, %p1481_p11 }
  0x45   :  { %p1484_p0 = pnand %p1483_p13, %p1477_p10 }
 0x114   :  { %v1195_v9 = vpop.f32.mrb[0].mxu0 }
 0x115   :  { %v1615_v10 = vadd.f32 %v1195_v9, %v1111_v8  ;;  %v151_v11 = vpop.f32.mrb[1].mxu0 }
 0x116   :  { %v1617_v12 = vadd.f32 %v1111_v8, %v151_v11 }
 0x118   :  { %1200 = vmatprep.mubr.msk.f32.mxu1 %vm168_vm1, %v1617_v12  ;;  %v1623_v13 = vpack.i.bf16 %v1615_v10, %v1617_v12 }
 0x11a   :  { %1339 = vrot.lane.b32.xlu0 %v1623_v13, %s1509_s12 }
 0x18c   :  { %v1340_v14 = vpop.permute.xlu0 %1339 }
 0x18d   :  { %v1342_v15 = vunpack.i.h.bf16 %v1340_v14  ;;  %v1341_v16 = vunpack.i.l.bf16 %v1340_v14 }
 0x18f   :  { %v1271_v18 = vpack.c.bf16 %v1342_v15, %v1341_v16 }
 0x191   :  { %1273 = vmatprep.subr.msk.bf16.mxu1 %vm1628_vm2, %v1271_v18 }
 0x192   :  { %1276 = vmatpush3.bf16.xpose.msk.msra.mxu1 %vm1628_vm2, %v1271_v18 }
 0x199   :  { %1201 = vmatmul.mubr.msk.f32.vlgmr.msra.gmra.mrb[0].mxu1 %vm168_vm1, %v1615_v10 }
 0x26c   :  { %v1202_v21 = vpop.f32.mrb[0].mxu1 }
 0x26d   :  { %v249_v22 = vadd.f32 %v1202_v21, %v1641_v19  ;;  %v243_v23 = vpop.f32.mrb[1].mxu1 }
 0x26e   :  { %v244_v24 = vadd.f32 %v243_v23, %v1646_v20 }
 0x26f   :  { %v256_v25 = vsel %vm252_vm3, %v249_v22, -inf }
 0x270   :  { %257 = vmax.xlane.f32.xlu1 %v256_v25  ;;  %v253_v26 = vsel %vm252_vm3, %v244_v24, -inf }
 0x271   :  { %254 = vmax.xlane.f32.xlu0 %v253_v26 }
 0x281   :  { %1344 = vrot.lane.b32.xlu1 %v1623_v13, %s1510_s16 }
 0x285   :  { %1349 = vrot.lane.b32.xlu1 %v1623_v13, %s1511_s17 }
 0x289   :  { %364 = vrot.lane.b32.xlu1 %v1617_v12, %s1512_s5 }
 0x28d   :  { %366 = vrot.lane.b32.xlu1 %v1615_v10, %s1512_s5 }
 0x2fd   :  { %v258_v27 = vpop.xlane.xlu1 %257 }
 0x2fe   :  { %v260_v28 = vsub.f32 %v249_v22, %v258_v27  ;;  %v255_v29 = vpop.xlane.xlu0 %254 }
 0x2ff   :  { %v259_v30 = vsub.f32 %v244_v24, %v255_v29 }
 0x300   :  { %v263_v31 = vmul.f32 1.442695, %v260_v28 }
 0x301   :  { %v261_v32 = vmul.f32 1.442695, %v259_v30  ;;  %v1345_v33 = vpop.permute.xlu1 %1344 }
 0x302   :  { %v1347_v34 = vunpack.i.h.bf16 %v1345_v33  ;;  %v1346_v35 = vunpack.i.l.bf16 %v1345_v33 }
 0x303   :  { %1378 = vpow2.f32 %v261_v32 }
 0x304   :  { %1380 = vpow2.f32 %v263_v31  ;;  %v1277_v36 = vpack.c.bf16 %v1347_v34, %v1346_v35 }
 0x305   :  { %v1350_v37 = vpop.permute.xlu1 %1349 }
 0x306   :  { %v1352_v38 = vunpack.i.h.bf16 %v1350_v37  ;;  %v1351_v39 = vunpack.i.l.bf16 %v1350_v37  ;;  %1278 = vmatprep.subr.bf16.mxu1 %v1277_v36 }
 0x307   :  { %1280 = vmatpush3.bf16.msra.mxu1 %v1277_v36 }
 0x308   :  { %v1281_v40 = vpack.c.bf16 %v1352_v38, %v1351_v39 }
 0x309   :  { %v365_v43 = vpop.permute.xlu1 %364 }
 0x30a   :  { %1283 = vmatprep.subr.msk.bf16.mxu1 %vm1628_vm2, %v1281_v40 }
 0x30d   :  { %v1658_v41 = vpop.eup %1378  ;;  %v367_v44 = vpop.permute.xlu1 %366 }
 0x30e   :  { %v1660_v42 = vpop.eup %1380  ;;  %1207 = vmatprep.mubr.msk.f32.mxu1 %vm252_vm3, %v1658_v41 }
 0x30f   :  { %1208 = vmatmul.mubr.msk.f32.vlgmr.msra.gmra.mrb[2].mxu1 %vm252_vm3, %v1660_v42 }
 0x310   :  { %1286 = vmatpush3.bf16.xpose.msk.msra.mxu1 %vm1628_vm2, %v1281_v40  ;;  %1214 = vmatprep.mubr.msk.f32.mxu1 %vm168_vm1, %v365_v43 }
 0x317   :  { %1215 = vmatmul.mubr.msk.f32.vlgmr.msra.gmra.mrb[4].mxu1 %vm168_vm1, %v367_v44 }
 0x3e2   :  { %v1670_v45 = vpop.f32.mrb[2].mxu1 }
 0x3e3   :  { %v1672_v46 = vpop.f32.mrb[3].mxu1 }
 0x3ea   :  { %v1216_v47 = vpop.f32.mrb[4].mxu1 }
 0x3eb   :  { %v452_v48 = vadd.f32 %v1216_v47, %v1641_v19  ;;  %v446_v49 = vpop.f32.mrb[5].mxu1 }
 0x3ec   :  { %v447_v50 = vadd.f32 %v446_v49, %v1646_v20 }
 0x3ed   :  { %v458_v51 = vsel %vm252_vm3, %v452_v48, -inf }
 0x3ee   :  { %459 = vmax.xlane.f32.xlu0 %v458_v51  ;;  %v455_v52 = vsel %vm252_vm3, %v447_v50, -inf }
 0x3ef   :  { %456 = vmax.xlane.f32.xlu1 %v455_v52 }
 0x400   :  { %1364 = vrot.lane.b32.xlu1 %v1623_v13, %s1513_s18 }
 0x404   :  { %1354 = vrot.lane.b32.xlu0 %v1623_v13, %s1514_s19  ;;  %1369 = vrot.lane.b32.xlu1 %v1623_v13, %s1515_s20 }
 0x408   :  { %1359 = vrot.lane.b32.xlu0 %v1623_v13, %s1516_s1 }
 0x40c   :  { %575 = vrot.lane.b32.xlu0 %v1617_v12, %s1517_s21 }
 0x410   :  { %577 = vrot.lane.b32.xlu0 %v1615_v10, %s1517_s21 }
 0x47b   :  { %v460_v53 = vpop.xlane.xlu0 %459 }
 0x47c   :  { %v462_v54 = vsub.f32 %v452_v48, %v460_v53  ;;  %v457_v55 = vpop.xlane.xlu1 %456 }
 0x47d   :  { %v461_v56 = vsub.f32 %v447_v50, %v457_v55 }
 0x47e   :  { %v465_v57 = vmul.f32 1.442695, %v462_v54 }
 0x47f   :  { %v463_v58 = vmul.f32 1.442695, %v461_v56  ;;  %v1355_v59 = vpop.permute.xlu0 %1354 }
 0x480   :  { %v1357_v60 = vunpack.i.h.bf16 %v1355_v59  ;;  %v1356_v61 = vunpack.i.l.bf16 %v1355_v59  ;;  %v1365_v62 = vpop.permute.xlu1 %1364 }
 0x481   :  { %1382 = vpow2.f32 %v463_v58  ;;  %v1367_v63 = vunpack.i.h.bf16 %v1365_v62  ;;  %v1366_v0 = vunpack.i.l.bf16 %v1365_v62 }
 0x482   :  { %1384 = vpow2.f32 %v465_v57  ;;  %v1287_v1 = vpack.c.bf16 %v1357_v60, %v1356_v61 }
 0x483   :  { %v1297_v2 = vpack.c.bf16 %v1367_v63, %v1366_v0  ;;  %v1360_v3 = vpop.permute.xlu0 %1359 }
 0x484   :  { %v1362_v4 = vunpack.i.h.bf16 %v1360_v3  ;;  %v1361_v5 = vunpack.i.l.bf16 %v1360_v3  ;;  %1288 = vmatprep.subr.bf16.mxu0 %v1287_v1  ;;  %v1370_v6 = vpop.permute.xlu1 %1369 }
 0x485   :  { %v1372_v7 = vunpack.i.h.bf16 %v1370_v6  ;;  %v1371_v8 = vunpack.i.l.bf16 %v1370_v6  ;;  %1290 = vmatpush3.bf16.msra.mxu0 %v1287_v1  ;;  %1298 = vmatprep.subr.bf16.mxu1 %v1297_v2 }
 0x486   :  { %v1291_v9 = vpack.c.bf16 %v1362_v4, %v1361_v5  ;;  %1300 = vmatpush3.bf16.msra.mxu1 %v1297_v2  ;;  %v265_v2 = vsel %vm252_vm3, %v1658_v41, 0.0 }
 0x487   :  { %v1301_v11 = vpack.c.bf16 %v1372_v7, %v1371_v8  ;;  %v576_v16 = vpop.permute.xlu0 %575 }
 0x488   :  { %1293 = vmatprep.subr.msk.bf16.mxu0 %vm1628_vm2, %v1291_v9 }
 0x489   :  { %1303 = vmatprep.subr.msk.bf16.mxu1 %vm1628_vm2, %v1301_v11 }
 0x48b   :  { %v1383_v14 = vpop.eup %1382  ;;  %v578_v18 = vpop.permute.xlu0 %577 }
 0x48c   :  { %v1385_v15 = vpop.eup %1384  ;;  %1221 = vmatprep.mubr.msk.f32.mxu0 %vm252_vm3, %v1383_v14 }
 0x48d   :  { %1222 = vmatmul.mubr.msk.f32.vlgmr.msra.gmra.mrb[2].mxu0 %vm252_vm3, %v1385_v15  ;;  %v470_v48 = vsel %vm252_vm3, %v1385_v15, 0.0 }
 0x48e   :  { %1296 = vmatpush3.bf16.xpose.msk.msra.mxu0 %vm1628_vm2, %v1291_v9  ;;  %1228 = vmatprep.mubr.msk.f32.mxu0 %vm168_vm1, %v576_v16 }
 0x495   :  { %1229 = vmatmul.mubr.msk.f32.vlgmr.msra.gmra.mrb[4].mxu0 %vm168_vm1, %v578_v18 }
 0x560   :  { %v1694_v21 = vpop.f32.mrb[2].mxu0 }
 0x561   :  { %v1696_v22 = vpop.f32.mrb[3].mxu0 }
 0x568   :  { %v1230_v23 = vpop.f32.mrb[4].mxu0 }
 0x569   :  { %v663_v24 = vadd.f32 %v1230_v23, %v1641_v19  ;;  %v657_v25 = vpop.f32.mrb[5].mxu0 }
 0x56a   :  { %v658_v26 = vadd.f32 %v657_v25, %v1646_v20 }
 0x56b   :  { %v669_v27 = vsel %vm252_vm3, %v663_v24, -inf }
 0x56c   :  { %670 = vmax.xlane.f32.xlu0 %v669_v27  ;;  %v666_v28 = vsel %vm252_vm3, %v658_v26, -inf }
 0x56d   :  { %667 = vmax.xlane.f32.xlu1 %v666_v28  ;;  %v999_v28 = vld [vmem:[#allocation8] sm:$0xff] }
 0x57e   :  { %786 = vrot.lane.b32.xlu1 %v1617_v12, %s1518_s22 }
 0x582   :  { %788 = vrot.lane.b32.xlu1 %v1615_v10, %s1518_s22 }
 0x5f9   :  { %v671_v29 = vpop.xlane.xlu0 %670 }
 0x5fa   :  { %v673_v30 = vsub.f32 %v663_v24, %v671_v29  ;;  %v668_v31 = vpop.xlane.xlu1 %667  ;;  %v1000_v29 = vld [vmem:[#allocation8 + $0x8] sm:$0xff] }
 0x5fb   :  { %v672_v32 = vsub.f32 %v658_v26, %v668_v31  ;;  %v1001_v31 = vld [vmem:[#allocation8 + $0x10] sm:$0xff] }
 0x5fc   :  { %v676_v33 = vmul.f32 1.442695, %v673_v30  ;;  %v1311_v30 = vpack.c.bf16 %v1000_v29, %v999_v28 }
 0x5fd   :  { %v674_v34 = vmul.f32 1.442695, %v672_v32  ;;  %v1002_v32 = vld [vmem:[#allocation8 + $0x18] sm:$0xff] }
 0x5fe   :  { %v787_v37 = vpop.permute.xlu1 %786 }
 0x5ff   :  { %1386 = vpow2.f32 %v674_v34 }
 0x600   :  { %1388 = vpow2.f32 %v676_v33  ;;  %v1315_v33 = vpack.c.bf16 %v1002_v32, %v1001_v31 }
 0x602   :  { %v789_v10 = vpop.permute.xlu1 %788 }
 0x609   :  { %v1387_v35 = vpop.eup %1386 }
 0x60a   :  { %v1389_v36 = vpop.eup %1388  ;;  %1235 = vmatprep.mubr.msk.f32.mxu1 %vm252_vm3, %v1387_v35  ;;  %v678_v49 = vsel %vm252_vm3, %v1387_v35, 0.0 }
 0x60b   :  { %1236 = vmatmul.mubr.msk.f32.vlgmr.msra.gmra.mrb[6].mxu1 %vm252_vm3, %v1389_v36  ;;  %v681_v50 = vsel %vm252_vm3, %v1389_v36, 0.0 }
 0x60c   :  { %1306 = vmatpush3.bf16.xpose.msk.msra.mxu1 %vm1628_vm2, %v1301_v11  ;;  %1242 = vmatprep.mubr.msk.f32.mxu1 %vm168_vm1, %v787_v37 }
 0x613   :  { %1243 = vmatmul.mubr.msk.f32.vlgmr.msra.gmra.mrb[8].mxu1 %vm168_vm1, %v789_v10 }
 0x6de   :  { %v1710_v12 = vpop.f32.mrb[6].mxu1 }
 0x6df   :  { %v1712_v38 = vpop.f32.mrb[7].mxu1 }
 0x6e6   :  { %v1244_v39 = vpop.f32.mrb[8].mxu1 }
 0x6e7   :  { %v874_v40 = vadd.f32 %v1244_v39, %v1641_v19  ;;  %v868_v43 = vpop.f32.mrb[9].mxu1  ;;  %v467_v19 = vsel %vm252_vm3, %v1383_v14, 0.0 }
 0x6e8   :  { %v869_v44 = vadd.f32 %v868_v43, %v1646_v20  ;;  %v268_v20 = vsel %vm252_vm3, %v1660_v42, 0.0  ;;  %v1138_v43 = vld [vmem:[%s1767_s4] ss:$0 sm:$0xff] }
 0x6e9   :  { %v880_v47 = vsel %vm252_vm3, %v874_v40, -inf }
 0x6ea   :  { %881 = vmax.xlane.f32.xlu0 %v880_v47  ;;  %v877_v17 = vsel %vm252_vm3, %v869_v44, -inf }
 0x6eb   :  { %878 = vmax.xlane.f32.xlu1 %v877_v17 }
 0x6ef   :  { %471 = vadd.xlane.f32.xlu1 %v470_v48 }
 0x6f3   :  { %679 = vadd.xlane.f32.xlu1 %v678_v49 }
 0x6f7   :  { %682 = vadd.xlane.f32.xlu1 %v681_v50 }
 0x700   :  { %1374 = vrot.lane.b32.xlu0 %v1623_v13, %s1519_s23 }
 0x71f   :  { %468 = vadd.xlane.f32.xlu0 %v467_v19 }
 0x723   :  { %269 = vadd.xlane.f32.xlu0 %v268_v20 }
 0x777   :  { %v882_v51 = vpop.xlane.xlu0 %881 }
 0x778   :  { %v884_v52 = vsub.f32 %v874_v40, %v882_v51  ;;  %v879_v53 = vpop.xlane.xlu1 %878 }
 0x779   :  { %v883_v54 = vsub.f32 %v869_v44, %v879_v53 }
 0x77a   :  { %v887_v55 = vmul.f32 1.442695, %v884_v52 }
 0x77b   :  { %v885_v56 = vmul.f32 1.442695, %v883_v54  ;;  %v1375_v57 = vpop.permute.xlu0 %1374 }
 0x77c   :  { %1390 = vpow2.f32 %v887_v55  ;;  %v1377_v58 = vunpack.i.h.bf16 %v1375_v57  ;;  %v1376_v59 = vunpack.i.l.bf16 %v1375_v57  ;;  %v472_v60 = vpop.xlane.xlu1 %471 }
 0x77d   :  { %1392 = vpow2.f32 %v885_v56 }
 0x77e   :  { %v1307_v13 = vpack.c.bf16 %v1377_v58, %v1376_v59  ;;  %1394 = vrcp.f32 %v472_v60 }
 0x780   :  { %1308 = vmatprep.subr.bf16.mxu0 %v1307_v13  ;;  %v680_v3 = vpop.xlane.xlu1 %679 }
 0x781   :  { %1310 = vmatpush3.bf16.msra.mxu0 %v1307_v13 }
 0x782   :  { %1312 = vmatprep.subr.bf16.mxu0 %v1311_v30 }
 0x784   :  { %v683_v5 = vpop.xlane.xlu1 %682 }
 0x786   :  { %v1391_v61 = vpop.eup %1390 }
 0x787   :  { %v1393_v62 = vpop.eup %1392  ;;  %v892_v1 = vsel %vm252_vm3, %v1391_v61, 0.0 }
 0x788   :  { %v1395_v42 = vpop.eup %1394  ;;  %1249 = vmatprep.mubr.msk.f32.mxu0 %vm252_vm3, %v1393_v62  ;;  %v889_v63 = vsel %vm252_vm3, %v1393_v62, 0.0 }
 0x789   :  { %1250 = vmatmul.mubr.msk.f32.vlgmr.msra.gmra.mrb[6].mxu0 %vm252_vm3, %v1391_v61  ;;  %890 = vadd.xlane.f32.xlu1 %v889_v63  ;;  %v563_v0 = vmul.f32 %v1395_v42, %v1694_v21 }
 0x78a   :  { %1314 = vmatpush3.bf16.msra.mxu0 %v1311_v30 }
 0x78b   :  { %568 = vrot.lane.b32.xlu0 %v563_v0, %s1507_s10  ;;  %1316 = vmatprep.subr.bf16.mxu0 %v1315_v33 }
 0x78d   :  { %893 = vadd.xlane.f32.xlu1 %v892_v1 }
 0x78e   :  { %1318 = vmatpush3.bf16.msra.mxu0 %v1315_v33 }
 0x791   :  { %266 = vadd.xlane.f32.xlu1 %v265_v2 }
 0x7ac   :  { %v469_v4 = vpop.xlane.xlu0 %468 }
 0x7ad   :  { %1396 = vrcp.f32 %v469_v4 }
 0x7ae   :  { %1398 = vrcp.f32 %v680_v3 }
 0x7b0   :  { %v270_v6 = vpop.xlane.xlu0 %269 }
 0x7b1   :  { %1400 = vrcp.f32 %v270_v6 }
 0x7b2   :  { %1402 = vrcp.f32 %v683_v5 }
 0x7b7   :  { %v1397_v7 = vpop.eup %1396 }
 0x7b8   :  { %v562_v8 = vmul.f32 %v1397_v7, %v1696_v22  ;;  %v1399_v9 = vpop.eup %1398 }
 0x7b9   :  { %v773_v41 = vmul.f32 %v1399_v9, %v1712_v38 }
 0x7ba   :  { %566 = vrot.lane.b32.xlu1 %v562_v8, %s1507_s10 }
 0x7bb   :  { %v1401_v11 = vpop.eup %1400 }
 0x7bc   :  { %v361_v14 = vmul.f32 %v1401_v11, %v1670_v45  ;;  %v1403_v15 = vpop.eup %1402 }
 0x7bd   :  { %v774_v16 = vmul.f32 %v1403_v15, %v1710_v12 }
 0x7be   :  { %363 = vst.msk [vmem:[#allocation2 + $0x8] sm:$0xff] %vm168_vm1, %v361_v14  ;;  %777 = vrot.lane.b32.xlu1 %v773_v41, %s1520_s25 }
 0x7c2   :  { %779 = vrot.lane.b32.xlu1 %v774_v16, %s1520_s25 }
 0x7fd   :  { %v569_v18 = vpop.permute.xlu0 %568 }
 0x7fe   :  { %574 = vst.msk [vmem:[#allocation2 + $0x8] sm:$0xff] %vm572_vm4, %v569_v18 }
 0x816   :  { %v891_v21 = vpop.xlane.xlu1 %890 }
 0x81a   :  { %v894_v22 = vpop.xlane.xlu1 %893 }
 0x81e   :  { %v267_v23 = vpop.xlane.xlu1 %266 }
 0x81f   :  { %1404 = vrcp.f32 %v267_v23 }
 0x820   :  { %1406 = vrcp.f32 %v894_v22 }
 0x821   :  { %1408 = vrcp.f32 %v891_v21 }
 0x829   :  { %v1405_v24 = vpop.eup %1404 }
 0x82a   :  { %v360_v45 = vmul.f32 %v1405_v24, %v1672_v46  ;;  %v1407_v46 = vpop.eup %1406 }
 0x82b   :  { %v1409_v35 = vpop.eup %1408 }
 0x82c   :  { %362 = vst.msk [vmem:[#allocation2] sm:$0xff] %vm168_vm1, %v360_v45  ;;  %v567_v25 = vpop.permute.xlu1 %566 }
 0x82d   :  { %573 = vst.msk [vmem:[#allocation2] sm:$0xff] %vm572_vm4, %v567_v25 }
 0x830   :  { %v778_v26 = vpop.permute.xlu1 %777 }
 0x831   :  { %784 = vst.msk [vmem:[#allocation2] sm:$0xff] %vm783_vm5, %v778_v26 }
 0x834   :  { %v780_v27 = vpop.permute.xlu1 %779 }
 0x835   :  { %785 = vst.msk [vmem:[#allocation2 + $0x8] sm:$0xff] %vm783_vm5, %v780_v27 }
 0x85c   :  { %v1251_v34 = vpop.f32.mrb[6].mxu0 }
 0x85d   :  { %v985_v36 = vmul.f32 %v1407_v46, %v1251_v34  ;;  %v973_v37 = vpop.f32.mrb[7].mxu0 }
 0x85e   :  { %v984_v10 = vmul.f32 %v1409_v35, %v973_v37 }
 0x85f   :  { %990 = vrot.lane.b32.xlu1 %v985_v36, %s1521_s26 }
 0x860   :  { %988 = vrot.lane.b32.xlu0 %v984_v10, %s1521_s26 }
 0x8d1   :  { %v991_v12 = vpop.permute.xlu1 %990 }
 0x8d2   :  { %996 = vst.msk [vmem:[#allocation2 + $0x8] sm:$0xff] %vm994_vm6, %v991_v12  ;;  %v989_v38 = vpop.permute.xlu0 %988 }
 0x8d3   :  { %995 = vst.msk [vmem:[#allocation2] sm:$0xff] %vm994_vm6, %v989_v38 }
 0x8d9   :  { %v998_v40 = vld [vmem:[#allocation2 + $0x8] sm:$0xff] }
 0x8da   :  { %v997_v39 = vld [vmem:[#allocation2] sm:$0xff] }
 0x8db   :  { %1260 = vmatprep.mubr.msk.f32.mxu0 %vm78_vm0, %v997_v39 }
 0x8dc   :  { %1261 = vmatmul.mubr.msk.f32.vlgmr.msra.gmra.mrb[8].mxu0 %vm78_vm0, %v998_v40 }
 0x9af   :  { %v1262_v44 = vpop.f32.mrb[8].mxu0 }
 0x9b0   :  { %v1088_v47 = vadd.f32 %v1262_v44, %v1138_v43  ;;  %v1082_v17 = vpop.f32.mrb[9].mxu0 }
 0x9b1   :  { %v1083_v48 = vadd.f32 %v1138_v43, %v1082_v17 }
 0x9b2   :  { %1092 = vst.msk [vmem:[#allocation9 + $0x8] sm:$0xff] %vm78_vm0, %v1088_v47 }
 0x9b3   :  { %1091 = vst.msk [vmem:[#allocation9] sm:$0xff] %vm78_vm0, %v1083_v48 }
 0x9b4   :  { %1487 = shalt.err (!%p1484_p0)
}
 0x9b5   :  { %s1488_s0 = scalar_lea.hbm %s1769_s6, 256 }
 0x9b6   :  { %p1489_p1 = scmp.ne.s32.totalorder %s1769_s6, %s1488_s0  ;;  %p1492_p2 = scmp.lt.u32.totalorder %s1488_s0, %s1769_s6 }
 0x9b8   :  { %p1494_p3 = pnand %p1492_p2, %p1489_p1 }
 0x9ba   :  { %1497 = shalt.err (!%p1494_p3)
}
 0x9bb   :  { %1104 = dma.vmem_to_hbm [thread:$0]  %s1099_s30, 256, %s1769_s6, [#allocation5], %s1506_s9, %s1506_s9, %s1507_s10  }
 0x9bc   :  { %1502 = dma.done.wait [#allocation5], 256  }
 0x9bd   :  { %1503 = vsyncadd [#allocation5], 4294967040 }
 0x9be   :  { %1108 = vsyncpa [#allocation4], 1 }
 0x9bf   :  { %1109 = vsyncpa [#allocation7], 1 }
 0x9c0   :  { %1110 = vsyncpa [#allocation5], 1 }

</bundles_post_ra>
